<compile_context>
chip_gen: v6e
topology: v6e:2x2x1
jax: 0.10.0
libtpu: 0.0.40
codegen_flags: <defaults>
</compile_context>

<pallas_src>
import jax
import jax.numpy as jnp
from jax.experimental import pallas as pl
from jax.experimental.pallas import tpu as pltpu

LEAKY_SLOPE = 0.2
LN_EPS = 1e-5        # PyTorch nn.LayerNorm default
SUBLANE = 8


def _layernorm(x, gamma, beta):
    # Two-pass stats (mean, then centered variance): avoids E[x^2]-E[x]^2
    # cancellation and matches the reference exactly.  Lanes are unpadded, so
    # jnp.mean divides by the real feature width.
    mu = jnp.mean(x, axis=-1, keepdims=True)
    xc = x - mu
    var = jnp.mean(xc * xc, axis=-1, keepdims=True)
    return xc * jax.lax.rsqrt(var + LN_EPS) * gamma + beta


def _make_kernel(matmul_dtype):
    matmul_dtype = jnp.dtype(matmul_dtype)
    needs_cast = matmul_dtype != jnp.dtype(jnp.float32)

    def kernel(x_ref, w1_ref, c1_ref, w2_ref, c2_ref, o_ref):
        x = x_ref[...]
        if needs_cast:
            x = x.astype(matmul_dtype)

        c1 = c1_ref[...]            # rows: [bias; gamma; beta]
        c2 = c2_ref[...]

        # Linear 1 (MXU, f32 accumulation) + LeakyReLU(0.2) + LayerNorm(h_dim)
        h = jnp.dot(x, w1_ref[...], preferred_element_type=jnp.float32)
        h = h + c1[0:1, :]
        h = jnp.maximum(h, LEAKY_SLOPE * h)          # LeakyReLU as mul+max
        h = _layernorm(h, c1[1:2, :], c1[2:3, :])

        # Linear 2 (MXU) + LeakyReLU(0.2) + LayerNorm(out_dim)
        if needs_cast:
            h = h.astype(matmul_dtype)
        z = jnp.dot(h, w2_ref[...], preferred_element_type=jnp.float32)
        z = z + c2[0:1, :]
        z = jnp.maximum(z, LEAKY_SLOPE * z)
        z = _layernorm(z, c2[1:2, :], c2[2:3, :])

        # Sigmoid (EUP) -> unpadded (tile_b, out_dim) store
        o_ref[...] = jax.nn.sigmoid(z).astype(o_ref.dtype)

    return kernel


def _vmem_limit_bytes(tile_b, in_dim, h_dim, out_dim, w_itemsize):
    act = tile_b * (in_dim + h_dim + out_dim) * 4            # live f32 tiles
    io_blocks = 2 * tile_b * (in_dim + out_dim) * 4          # double-buffered
    weights = 2 * (in_dim * h_dim + h_dim * out_dim) * w_itemsize
    consts = 2 * 3 * (h_dim + out_dim) * 4
    need = act + io_blocks + weights + consts
    # Generous headroom, but never past ~48 MiB (v7x physical VMEM is 64 MiB).
    return int(min(max(4 * need, 32 << 20), 48 << 20))


def cast_matmul_weights(params, dtype):
    """Cast the two Linear weights once (hoisted out of the per-call forward);
    biases / LayerNorm params stay f32."""
    w1, c1, w2, c2 = params
    return (w1.astype(dtype), c1, w2.astype(dtype), c2)


def discriminator_forward(x, params, *, tile_b=None):
    """x: [B, in_dim] -> [B, out_dim] (f32).

    params = (w1 [in,h], c1 [3,h] = bias/gamma/beta, w2 [h,out], c2 [3,out]).
    Matmul operand dtype follows the weight dtype (use cast_matmul_weights to
    switch to bf16 operands once, outside this function).
    """
    w1, c1, w2, c2 = params
    B, in_dim = x.shape
    h_dim = w1.shape[1]
    out_dim = w2.shape[1]
    matmul_dtype = jnp.dtype(w1.dtype)

    # Batch tiling: cap at 256 rows (vreg pressure / MXU cadence); keep >=2
    # grid steps when the batch allows so the "parallel" axis can shard across
    # v7x's 2 TensorCores.  Small batches use a single full-batch block
    # (block dim == full array dim is always legal).
    if tile_b is None:
        if B >= 512:
            tile_b = 256
        elif B >= 256:
            tile_b = 128
        else:
            tile_b = B
    grid = (pl.cdiv(B, tile_b),)

    row = lambda i: (i, 0)    # activations: tile over batch
    full = lambda i: (0, 0)   # weights/constants: same block every grid step

    kernel = _make_kernel(matmul_dtype)

    flops = 2 * B * (in_dim * h_dim + h_dim * out_dim)
    transcendentals = B * (out_dim + 2)                 # sigmoid + 2 rsqrt/row
    bytes_accessed = (4 * (x.size + c1.size + c2.size + B * out_dim)
                      + matmul_dtype.itemsize * (w1.size + w2.size))

    out = pl.pallas_call(
        kernel,
        out_shape=jax.ShapeDtypeStruct((B, out_dim), jnp.float32),
        grid_spec=pltpu.PrefetchScalarGridSpec(
            num_scalar_prefetch=0,
            grid=grid,
            in_specs=[
                pl.BlockSpec((tile_b, in_dim), row),    # x (unpadded lanes)
                pl.BlockSpec((in_dim, h_dim), full),    # w1 (pre-transposed)
                pl.BlockSpec((3, h_dim), full),         # b1 / gamma1 / beta1
                pl.BlockSpec((h_dim, out_dim), full),   # w2 (pre-transposed)
                pl.BlockSpec((3, out_dim), full),       # b2 / gamma2 / beta2
            ],
            out_specs=pl.BlockSpec((tile_b, out_dim), row),
        ),
        compiler_params=pltpu.CompilerParams(
            dimension_semantics=("parallel",),
            vmem_limit_bytes=_vmem_limit_bytes(
                tile_b, in_dim, h_dim, out_dim, matmul_dtype.itemsize)),
        cost_estimate=pl.CostEstimate(
            flops=flops,
            transcendentals=transcendentals,
            bytes_accessed=bytes_accessed),
    )(x.astype(jnp.float32), w1, c1, w2, c2)

    return out


def init_params(key, in_dim, h_dim, out_dim):
    """Match PyTorch init: xavier_normal_ on Linear weights, zero biases,
    LayerNorm weight=1 / bias=0.  Weights stored transposed (in, out);
    bias/gamma/beta packed as rows of a (3, feat) block."""
    k1, k2 = jax.random.split(key)

    def xavier_normal(k, fan_in, fan_out):
        std = (2.0 / (fan_in + fan_out)) ** 0.5
        w_torch = std * jax.random.normal(k, (fan_out, fan_in), jnp.float32)
        return w_torch.T

    w1 = xavier_normal(k1, in_dim, h_dim)
    w2 = xavier_normal(k2, h_dim, out_dim)
    c1 = jnp.stack([jnp.zeros(h_dim, jnp.float32),   # bias
                    jnp.ones(h_dim, jnp.float32),    # LN gamma
                    jnp.zeros(h_dim, jnp.float32)])  # LN beta
    c2 = jnp.stack([jnp.zeros(out_dim, jnp.float32),
                    jnp.ones(out_dim, jnp.float32),
                    jnp.zeros(out_dim, jnp.float32)])
    return (w1, c1, w2, c2)


def _layernorm_ref(x, gamma, beta):
    mu = jnp.mean(x, axis=-1, keepdims=True)
    var = jnp.mean((x - mu) ** 2, axis=-1, keepdims=True)
    return (x - mu) * jax.lax.rsqrt(var + LN_EPS) * gamma + beta


def reference_forward(x, params):
    """Plain-JAX reference mirroring the PyTorch forward (always f32)."""
    w1, c1, w2, c2 = params
    w1 = w1.astype(jnp.float32)
    w2 = w2.astype(jnp.float32)
    b1, g1, be1 = c1[0], c1[1], c1[2]
    b2, g2, be2 = c2[0], c2[1], c2[2]
    h = x @ w1 + b1
    h = jnp.where(h > 0, h, LEAKY_SLOPE * h)
    h = _layernorm_ref(h, g1, be1)
    z = h @ w2 + b2
    z = jnp.where(z > 0, z, LEAKY_SLOPE * z)
    z = _layernorm_ref(z, g2, be2)
    return jax.nn.sigmoid(z)


if __name__ == "__main__":
    key = jax.random.PRNGKey(0)
    kx, kp = jax.random.split(key)

    # Small, but a big enough batch for 128-row tiles / a 2-step parallel grid.
    B, in_dim, h_dim, out_dim = 256, 48, 32, 16
    x = jax.random.normal(kx, (B, in_dim), jnp.float32)
    params = init_params(kp, in_dim, h_dim, out_dim)

    ref = reference_forward(x, params)

    # f32 matmul path (tight tolerance vs reference).
    out = jax.block_until_ready(discriminator_forward(x, params))
    assert out.shape == (B, out_dim)
    assert jnp.allclose(out, ref, atol=2e-5, rtol=1e-4), "f32 path mismatch"

    # bf16 matmul path (weights cast ONCE outside the forward); looser tol.
    params_bf16 = cast_matmul_weights(params, jnp.bfloat16)
    out_bf16 = jax.block_until_ready(discriminator_forward(x, params_bf16))
    assert out_bf16.shape == (B, out_dim)
    assert jnp.allclose(out_bf16, ref, atol=5e-2), "bf16 path mismatch"

    print("KERNEL_OK")
</pallas_src>

<mosaic_0001>
module attributes {stable_mosaic.version = 11 : i64} {
  func.func @kernel(%arg0: i32, %arg1: memref<128x48xf32, #tpu.memory_space<vmem>>, %arg2: memref<48x32xf32, #tpu.memory_space<vmem>>, %arg3: memref<3x32xf32, #tpu.memory_space<vmem>>, %arg4: memref<32x16xf32, #tpu.memory_space<vmem>>, %arg5: memref<3x16xf32, #tpu.memory_space<vmem>>, %arg6: memref<128x16xf32, #tpu.memory_space<vmem>>) attributes {dimension_semantics = [#tpu.dimension_semantics<parallel>], iteration_bounds = array<i64: 2>, scalar_prefetch = 0 : i64, scratch_operands = 0 : i64, tpu.core_type = #tpu.core_type<tc>, window_params = [{transform_indices = @transform_0, window_bounds = array<i64: 128, 48>}, {pipeline_mode = #tpu.pipeline_mode<synchronous>, transform_indices = @transform_1, window_bounds = array<i64: 48, 32>}, {pipeline_mode = #tpu.pipeline_mode<synchronous>, transform_indices = @transform_2, window_bounds = array<i64: 3, 32>}, {pipeline_mode = #tpu.pipeline_mode<synchronous>, transform_indices = @transform_3, window_bounds = array<i64: 32, 16>}, {pipeline_mode = #tpu.pipeline_mode<synchronous>, transform_indices = @transform_4, window_bounds = array<i64: 3, 16>}, {transform_indices = @transform_5, window_bounds = array<i64: 128, 16>}]} {
    %c0 = arith.constant 0 : index
    %c0_0 = arith.constant 0 : index
    %0 = vector.load %arg1[%c0, %c0_0] : memref<128x48xf32, #tpu.memory_space<vmem>>, vector<128x48xf32>
    %c0_1 = arith.constant 0 : index
    %c0_2 = arith.constant 0 : index
    %1 = vector.load %arg3[%c0_1, %c0_2] : memref<3x32xf32, #tpu.memory_space<vmem>>, vector<3x32xf32>
    %c0_3 = arith.constant 0 : index
    %c0_4 = arith.constant 0 : index
    %2 = vector.load %arg5[%c0_3, %c0_4] : memref<3x16xf32, #tpu.memory_space<vmem>>, vector<3x16xf32>
    %c0_5 = arith.constant 0 : index
    %c0_6 = arith.constant 0 : index
    %3 = vector.load %arg2[%c0_5, %c0_6] : memref<48x32xf32, #tpu.memory_space<vmem>>, vector<48x32xf32>
    %cst = arith.constant dense<0.000000e+00> : vector<128x32xf32>
    %4 = tpu.matmul %0, %3, %cst {dimension_numbers = #tpu.dot_dimension_numbers<[1], [0], [0], [1], [0, 0, 1, 1], [], []>} : vector<128x48xf32>, vector<48x32xf32>, vector<128x32xf32> -> vector<128x32xf32>
    %5 = vector.extract_strided_slice %1 {offsets = [0, 0], sizes = [1, 32], strides = [1, 1]} : vector<3x32xf32> to vector<1x32xf32>
    %6 = vector.broadcast %5 : vector<1x32xf32> to vector<128x32xf32>
    %7 = arith.addf %4, %6 : vector<128x32xf32>
    %cst_7 = arith.constant 2.000000e-01 : f32
    %8 = vector.broadcast %cst_7 : f32 to vector<128x32xf32>
    %9 = arith.mulf %8, %7 : vector<128x32xf32>
    %10 = arith.maximumf %7, %9 : vector<128x32xf32>
    %11 = vector.extract_strided_slice %1 {offsets = [1, 0], sizes = [1, 32], strides = [1, 1]} : vector<3x32xf32> to vector<1x32xf32>
    %12 = vector.extract_strided_slice %1 {offsets = [2, 0], sizes = [1, 32], strides = [1, 1]} : vector<3x32xf32> to vector<1x32xf32>
    %cst_8 = arith.constant dense<0.000000e+00> : vector<128xf32>
    %13 = vector.multi_reduction <add>, %10, %cst_8 [1] : vector<128x32xf32> to vector<128xf32>
    %14 = vector.shape_cast %13 : vector<128xf32> to vector<128x1xf32>
    %cst_9 = arith.constant 3.200000e+01 : f32
    %15 = vector.broadcast %cst_9 : f32 to vector<128x1xf32>
    %16 = arith.divf %14, %15 : vector<128x1xf32>
    %17 = vector.broadcast %16 : vector<128x1xf32> to vector<128x32xf32>
    %18 = arith.subf %10, %17 : vector<128x32xf32>
    %19 = arith.mulf %18, %18 : vector<128x32xf32>
    %cst_10 = arith.constant dense<0.000000e+00> : vector<128xf32>
    %20 = vector.multi_reduction <add>, %19, %cst_10 [1] : vector<128x32xf32> to vector<128xf32>
    %21 = vector.shape_cast %20 : vector<128xf32> to vector<128x1xf32>
    %cst_11 = arith.constant 3.200000e+01 : f32
    %22 = vector.broadcast %cst_11 : f32 to vector<128x1xf32>
    %23 = arith.divf %21, %22 : vector<128x1xf32>
    %cst_12 = arith.constant 9.99999974E-6 : f32
    %24 = vector.broadcast %cst_12 : f32 to vector<128x1xf32>
    %25 = arith.addf %23, %24 : vector<128x1xf32>
    %26 = math.rsqrt %25 : vector<128x1xf32>
    %27 = vector.broadcast %26 : vector<128x1xf32> to vector<128x32xf32>
    %28 = arith.mulf %18, %27 : vector<128x32xf32>
    %29 = vector.broadcast %11 : vector<1x32xf32> to vector<128x32xf32>
    %30 = arith.mulf %28, %29 : vector<128x32xf32>
    %31 = vector.broadcast %12 : vector<1x32xf32> to vector<128x32xf32>
    %32 = arith.addf %30, %31 : vector<128x32xf32>
    %c0_13 = arith.constant 0 : index
    %c0_14 = arith.constant 0 : index
    %33 = vector.load %arg4[%c0_13, %c0_14] : memref<32x16xf32, #tpu.memory_space<vmem>>, vector<32x16xf32>
    %cst_15 = arith.constant dense<0.000000e+00> : vector<128x16xf32>
    %34 = tpu.matmul %32, %33, %cst_15 {dimension_numbers = #tpu.dot_dimension_numbers<[1], [0], [0], [1], [0, 0, 1, 1], [], []>} : vector<128x32xf32>, vector<32x16xf32>, vector<128x16xf32> -> vector<128x16xf32>
    %35 = vector.extract_strided_slice %2 {offsets = [0, 0], sizes = [1, 16], strides = [1, 1]} : vector<3x16xf32> to vector<1x16xf32>
    %36 = vector.broadcast %35 : vector<1x16xf32> to vector<128x16xf32>
    %37 = arith.addf %34, %36 : vector<128x16xf32>
    %cst_16 = arith.constant 2.000000e-01 : f32
    %38 = vector.broadcast %cst_16 : f32 to vector<128x16xf32>
    %39 = arith.mulf %38, %37 : vector<128x16xf32>
    %40 = arith.maximumf %37, %39 : vector<128x16xf32>
    %41 = vector.extract_strided_slice %2 {offsets = [1, 0], sizes = [1, 16], strides = [1, 1]} : vector<3x16xf32> to vector<1x16xf32>
    %42 = vector.extract_strided_slice %2 {offsets = [2, 0], sizes = [1, 16], strides = [1, 1]} : vector<3x16xf32> to vector<1x16xf32>
    %cst_17 = arith.constant dense<0.000000e+00> : vector<128xf32>
    %43 = vector.multi_reduction <add>, %40, %cst_17 [1] : vector<128x16xf32> to vector<128xf32>
    %44 = vector.shape_cast %43 : vector<128xf32> to vector<128x1xf32>
    %cst_18 = arith.constant 1.600000e+01 : f32
    %45 = vector.broadcast %cst_18 : f32 to vector<128x1xf32>
    %46 = arith.divf %44, %45 : vector<128x1xf32>
    %47 = vector.broadcast %46 : vector<128x1xf32> to vector<128x16xf32>
    %48 = arith.subf %40, %47 : vector<128x16xf32>
    %49 = arith.mulf %48, %48 : vector<128x16xf32>
    %cst_19 = arith.constant dense<0.000000e+00> : vector<128xf32>
    %50 = vector.multi_reduction <add>, %49, %cst_19 [1] : vector<128x16xf32> to vector<128xf32>
    %51 = vector.shape_cast %50 : vector<128xf32> to vector<128x1xf32>
    %cst_20 = arith.constant 1.600000e+01 : f32
    %52 = vector.broadcast %cst_20 : f32 to vector<128x1xf32>
    %53 = arith.divf %51, %52 : vector<128x1xf32>
    %cst_21 = arith.constant 9.99999974E-6 : f32
    %54 = vector.broadcast %cst_21 : f32 to vector<128x1xf32>
    %55 = arith.addf %53, %54 : vector<128x1xf32>
    %56 = math.rsqrt %55 : vector<128x1xf32>
    %57 = vector.broadcast %56 : vector<128x1xf32> to vector<128x16xf32>
    %58 = arith.mulf %48, %57 : vector<128x16xf32>
    %59 = vector.broadcast %41 : vector<1x16xf32> to vector<128x16xf32>
    %60 = arith.mulf %58, %59 : vector<128x16xf32>
    %61 = vector.broadcast %42 : vector<1x16xf32> to vector<128x16xf32>
    %62 = arith.addf %60, %61 : vector<128x16xf32>
    %63 = arith.negf %62 : vector<128x16xf32>
    %64 = math.exp %63 : vector<128x16xf32>
    %cst_22 = arith.constant 1.000000e+00 : f32
    %65 = vector.broadcast %cst_22 : f32 to vector<128x16xf32>
    %66 = arith.addf %65, %64 : vector<128x16xf32>
    %67 = arith.divf %65, %66 : vector<128x16xf32>
    %c0_23 = arith.constant 0 : index
    %c0_24 = arith.constant 0 : index
    %68 = vector.load %arg6[%c0_23, %c0_24] : memref<128x16xf32, #tpu.memory_space<vmem>>, vector<128x16xf32>
    tpu.vector_store %arg6[%c0_23, %c0_24], %67 {strides = array<i32>} : memref<128x16xf32, #tpu.memory_space<vmem>>, vector<128x16xf32>,
    return
  }
  func.func @transform_0(%arg0: i32) -> (i32, i32) {
    %c0_i32 = arith.constant 0 : i32
    %c0_i32_0 = arith.constant 0 : i32
    return %arg0, %c0_i32 : i32, i32
  }
  func.func @transform_1(%arg0: i32) -> (i32, i32) {
    %c0_i32 = arith.constant 0 : i32
    %c0_i32_0 = arith.constant 0 : i32
    %c0_i32_1 = arith.constant 0 : i32
    return %c0_i32, %c0_i32_0 : i32, i32
  }
  func.func @transform_2(%arg0: i32) -> (i32, i32) {
    %c0_i32 = arith.constant 0 : i32
    %c0_i32_0 = arith.constant 0 : i32
    %c0_i32_1 = arith.constant 0 : i32
    return %c0_i32, %c0_i32_0 : i32, i32
  }
  func.func @transform_3(%arg0: i32) -> (i32, i32) {
    %c0_i32 = arith.constant 0 : i32
    %c0_i32_0 = arith.constant 0 : i32
    %c0_i32_1 = arith.constant 0 : i32
    return %c0_i32, %c0_i32_0 : i32, i32
  }
  func.func @transform_4(%arg0: i32) -> (i32, i32) {
    %c0_i32 = arith.constant 0 : i32
    %c0_i32_0 = arith.constant 0 : i32
    %c0_i32_1 = arith.constant 0 : i32
    return %c0_i32, %c0_i32_0 : i32, i32
  }
  func.func @transform_5(%arg0: i32) -> (i32, i32) {
    %c0_i32 = arith.constant 0 : i32
    %c0_i32_0 = arith.constant 0 : i32
    return %arg0, %c0_i32 : i32, i32
  }
}

</mosaic_0001>

<bundles_post_ra>
// kernel: tpu_custom_call.1
= control target key start
LH: loop header
LB: loop body
LE: loop exit
PB: predicated region body
PF: predicated region fallthrough
CT: control target
= control target key end

     0   :  { %s1726_s18 = smov 0   ;;  %s2357_s0 = inlined_call_operand.vmem [shape: f32[256,48], index: 0, kind: input, shape index: {}]   ;;  %s2358_s1 = inlined_call_operand.vmem [shape: f32[48,32], index: 1, kind: input, shape index: {}]   ;;  %s2359_s2 = inlined_call_operand.vmem [shape: f32[3,32], index: 2, kind: input, shape index: {}]   ;;  %s2360_s3 = inlined_call_operand.vmem [shape: f32[32,16], index: 3, kind: input, shape index: {}]   ;;  %s2361_s4 = inlined_call_operand.vmem [shape: f32[3,16], index: 4, kind: input, shape index: {}]   ;;  %s2362_s5 = inlined_call_operand.vmem [shape: f32[256,16], index: 5, kind: output, shape index: {}]  }
   0x1 LB: > { %s1383_s19 = sadd.s32 4294967295, %s1694_s18   ;;  %p1387_p0 = scmp.ge.s32.totalorder %s1694_s18, 1  ;;  %s1694_s18 = sphi %s1726_s18, %s15_s18  }
   0x2   : > { %p188_p1 = scmp.lt.s32.totalorder %s1694_s18, 3 }
   0x4   : > { %p189_p2 = pnand %p1387_p0, %p188_p1 }
   0x5   : > { %s1388_s24 = sshll.u32 (!%p189_p2), %s1383_s19, 4 }
   0x6   : > { %192 = sbr.rel (%p189_p2) target bundleno = 1111 (0x457), region = 40  ;;  %p217_p3 = scmp.lt.s32.totalorder (!%p189_p2), %s1388_s24, 31 }
   0xb   : > { %v251_v0 = vld [vmem:[%s2358_s1 + $0x28] sm:$0xff]  ;;  %v250_v1 = vld [vmem:[%s2358_s1 + $0x20] sm:$0xff]  ;;  %v249_v2 = vld [vmem:[%s2358_s1 + $0x18] sm:$0xff]  ;;  %s2364_s24 = smov (!%p217_p3, %s1388_s24), 31  ;;  %vm256_vm0 = vcmask 392192   ;;  %v252_v22 = vlaneseq  ;;  %vm482_vm1 = vcmask 261120  }
   0xc   : > { %1484 = vmatprep.subr.mxu0 %v251_v0  ;;  %v248_v3 = vld [vmem:[%s2358_s1 + $0x10] sm:$0xff]  ;;  %s1389_s29 = sshll.u32 %s2364_s24, 3  ;;  %v247_v4 = vld [vmem:[%s2358_s1 + $0x8] sm:$0xff]  ;;  %v246_v6 = vld [vmem:[%s2358_s1] sm:$0xff]  ;;  %vm965_vm2 = vcmask 130048  }
   0xd   : > { %1485 = vmatpush3.msra.mxu0 %v251_v0  ;;  %s1757_s9 = scalar_lea.vmem %s2357_s0, %s1389_s29  ;;  %v1794_v23 = vshrl.u32 %v252_v22, 7  ;;  %v1800_v25 = vld [vmem:[%s2359_s2] sm:$0x7]  ;;  %s2318_s28 = scalar_lea.vmem %s2362_s5, %s1389_s29 }
   0xe   : > { %1486 = vmatprep.subr.mxu0 %v250_v1  ;;  %v228_v5 = vld [vmem:[%s1757_s9] sm:$0xff]  ;;  %v229_v7 = vld [vmem:[%s1757_s9 + $0x8] sm:$0xff]  ;;  %v230_v8 = vld [vmem:[%s1757_s9 + $0x10] sm:$0xff] }
   0xf   : > { %1487 = vmatpush3.msra.mxu0 %v250_v1  ;;  %1496 = vmatprep.mubr.msk.f32.mxu0 %vm256_vm0, %v228_v5  ;;  %v231_v9 = vld [vmem:[%s1757_s9 + $0x18] sm:$0xff]  ;;  %v232_v10 = vld [vmem:[%s1757_s9 + $0x20] sm:$0xff]  ;;  %v233_v11 = vld [vmem:[%s1757_s9 + $0x28] sm:$0xff]  ;;  %v254_v24 = vsub.s32 0, %v1794_v23 }
  0x10   : > { %1488 = vmatprep.subr.mxu0 %v249_v2  ;;  %v234_v12 = vld [vmem:[%s1757_s9 + $0x30] sm:$0xff]  ;;  %v235_v13 = vld [vmem:[%s1757_s9 + $0x38] sm:$0xff]  ;;  %v236_v14 = vld [vmem:[%s1757_s9 + $0x40] sm:$0xff] }
  0x11   : > { %1489 = vmatpush3.msra.mxu0 %v249_v2  ;;  %v237_v15 = vld [vmem:[%s1757_s9 + $0x48] sm:$0xff]  ;;  %v238_v16 = vld [vmem:[%s1757_s9 + $0x50] sm:$0xff]  ;;  %v239_v17 = vld [vmem:[%s1757_s9 + $0x58] sm:$0xff]  ;;  %v1805_v26 = vrot.slane %v1800_v25, %v254_v24 }
  0x12   : > { %1490 = vmatprep.subr.mxu0 %v248_v3  ;;  %v240_v18 = vld [vmem:[%s1757_s9 + $0x60] sm:$0xff]  ;;  %v241_v19 = vld [vmem:[%s1757_s9 + $0x68] sm:$0xff]  ;;  %v242_v20 = vld [vmem:[%s1757_s9 + $0x70] sm:$0xff] }
  0x13   : > { %1491 = vmatpush3.msra.mxu0 %v248_v3  ;;  %v243_v21 = vld [vmem:[%s1757_s9 + $0x78] sm:$0xff] }
  0x14   : > { %1492 = vmatprep.subr.mxu0 %v247_v4 }
  0x15   : > { %1493 = vmatpush3.msra.mxu0 %v247_v4 }
  0x16   : > { %1494 = vmatprep.subr.mxu0 %v246_v6 }
  0x17   : > { %1495 = vmatpush3.msra.mxu0 %v246_v6 }
  0x18   : > { %1497 = vmatmul.mubr.msk.f32.vlgmr.msra.gmra.mxu0 %vm256_vm0, %v229_v7 }
  0x19   : > { %1499 = vmatprep.mubr.msk.f32.mxu0 %vm256_vm0, %v230_v8 }
  0x1c   : > { %1500 = vmatmul.mubr.msk.f32.gmra.mxu0 %vm256_vm0, %v231_v9 }
  0x1d   : > { %1502 = vmatprep.mubr.msk.f32.mxu0 %vm256_vm0, %v232_v10 }
  0x20   : > { %1503 = vmatmul.mubr.msk.f32.gmra.mxu0 %vm256_vm0, %v233_v11 }
  0x21   : > { %1505 = vmatprep.mubr.msk.f32.mxu0 %vm256_vm0, %v234_v12 }
  0x24   : > { %1506 = vmatmul.mubr.msk.f32.gmra.mxu0 %vm256_vm0, %v235_v13 }
  0x25   : > { %1508 = vmatprep.mubr.msk.f32.mxu0 %vm256_vm0, %v236_v14 }
  0x28   : > { %1509 = vmatmul.mubr.msk.f32.gmra.mxu0 %vm256_vm0, %v237_v15 }
  0x29   : > { %1511 = vmatprep.mubr.msk.f32.mxu0 %vm256_vm0, %v238_v16 }
  0x2c   : > { %1512 = vmatmul.mubr.msk.f32.gmra.mxu0 %vm256_vm0, %v239_v17 }
  0x2d   : > { %1514 = vmatprep.mubr.msk.f32.mxu0 %vm256_vm0, %v240_v18 }
  0x30   : > { %1515 = vmatmul.mubr.msk.f32.gmra.mxu0 %vm256_vm0, %v241_v19 }
  0x31   : > { %1517 = vmatprep.mubr.msk.f32.mxu0 %vm256_vm0, %v242_v20 }
  0x34   : > { %1518 = vmatmul.mubr.msk.f32.gmra.mxu0 %vm256_vm0, %v243_v21 }
  0xd8   : > { %v1498_v27 = vpop.f32.mrf.mxu0 }
  0xd9   : > { %v377_v28 = vadd.f32 %v1498_v27, %v1805_v26 }
  0xda   : > { %v371_v29 = vpop.f32.mrf.mxu0 }
  0xdb   : > { %v372_v30 = vadd.f32 %v371_v29, %v1805_v26  ;;  %v451_v32 = vmul.f32 0.2, %v377_v28 }
  0xdc   : > { %v1501_v31 = vpop.f32.mrf.mxu0 }
  0xdd   : > { %v450_v33 = vmul.f32 0.2, %v372_v30  ;;  %v387_v34 = vadd.f32 %v1501_v31, %v1805_v26  ;;  %v1816_v43 = vmax.f32 %v377_v28, %v451_v32 }
  0xde   : > { %v381_v35 = vpop.f32.mrf.mxu0 }
  0xdf   : > { %v382_v36 = vadd.f32 %v381_v35, %v1805_v26  ;;  %v1811_v37 = vmax.f32 %v372_v30, %v450_v33  ;;  %v453_v38 = vmul.f32 0.2, %v387_v34  ;;  %v486_v53 = vsel %vm482_vm1, %v1816_v43, 0.0 }
  0xe0   : > { %v1504_v39 = vpop.f32.mrf.mxu0 }
  0xe1   : > { %v452_v40 = vmul.f32 0.2, %v382_v36  ;;  %v397_v41 = vadd.f32 %v1504_v39, %v1805_v26  ;;  %v483_v42 = vsel %vm482_vm1, %v1811_v37, 0.0  ;;  %v1821_v49 = vmax.f32 %v387_v34, %v453_v38 }
  0xe2   : > { %v391_v44 = vpop.f32.mrf.mxu0  ;;  %484 = vadd.xlane.f32.xlu0 %v483_v42 }
  0xe3   : > { %v392_v45 = vadd.f32 %v391_v44, %v1805_v26  ;;  %v1819_v46 = vmax.f32 %v382_v36, %v452_v40  ;;  %v455_v47 = vmul.f32 0.2, %v397_v41  ;;  %v492_v58 = vsel %vm482_vm1, %v1821_v49, 0.0 }
  0xe4   : > { %v1507_v48 = vpop.f32.mrf.mxu0 }
  0xe5   : > { %v454_v50 = vmul.f32 0.2, %v392_v45  ;;  %v407_v51 = vadd.f32 %v1507_v48, %v1805_v26  ;;  %v489_v52 = vsel %vm482_vm1, %v1819_v46, 0.0  ;;  %v1833_v59 = vmax.f32 %v397_v41, %v455_v47 }
  0xe6   : > { %v401_v54 = vpop.f32.mrf.mxu0  ;;  %490 = vadd.xlane.f32.xlu1 %v489_v52  ;;  %487 = vadd.xlane.f32.xlu0 %v486_v53 }
  0xe7   : > { %v402_v55 = vadd.f32 %v401_v54, %v1805_v26  ;;  %v1829_v56 = vmax.f32 %v392_v45, %v454_v50  ;;  %v457_v60 = vmul.f32 0.2, %v407_v51  ;;  %v498_v5 = vsel %vm482_vm1, %v1833_v59, 0.0 }
  0xe8   : > { %v1510_v57 = vpop.f32.mrf.mxu0 }
  0xe9   : > { %v456_v61 = vmul.f32 0.2, %v402_v55  ;;  %v417_v62 = vadd.f32 %v1510_v57, %v1805_v26  ;;  %v495_v63 = vsel %vm482_vm1, %v1829_v56, 0.0  ;;  %v1846_v9 = vmax.f32 %v407_v51, %v457_v60 }
  0xea   : > { %v411_v0 = vpop.f32.mrf.mxu0  ;;  %493 = vadd.xlane.f32.xlu1 %v492_v58  ;;  %496 = vadd.xlane.f32.xlu0 %v495_v63 }
  0xeb   : > { %v412_v1 = vadd.f32 %v411_v0, %v1805_v26  ;;  %v1839_v2 = vmax.f32 %v402_v55, %v456_v61  ;;  %v459_v3 = vmul.f32 0.2, %v417_v62  ;;  %v504_v18 = vsel %vm482_vm1, %v1846_v9, 0.0 }
  0xec   : > { %v1513_v4 = vpop.f32.mrf.mxu0 }
  0xed   : > { %v458_v6 = vmul.f32 0.2, %v412_v1  ;;  %v427_v7 = vadd.f32 %v1513_v4, %v1805_v26  ;;  %v501_v8 = vsel %vm482_vm1, %v1839_v2, 0.0  ;;  %v1851_v15 = vmax.f32 %v417_v62, %v459_v3 }
  0xee   : > { %v421_v10 = vpop.f32.mrf.mxu0  ;;  %499 = vadd.xlane.f32.xlu1 %v498_v5  ;;  %502 = vadd.xlane.f32.xlu0 %v501_v8 }
  0xef   : > { %v422_v11 = vadd.f32 %v421_v10, %v1805_v26  ;;  %v1849_v12 = vmax.f32 %v412_v1, %v458_v6  ;;  %v461_v13 = vmul.f32 0.2, %v427_v7  ;;  %v510_v28 = vsel %vm482_vm1, %v1851_v15, 0.0 }
  0xf0   : > { %v1516_v14 = vpop.f32.mrf.mxu0 }
  0xf1   : > { %v460_v16 = vmul.f32 0.2, %v422_v11  ;;  %v437_v17 = vadd.f32 %v1516_v14, %v1805_v26  ;;  %v507_v19 = vsel %vm482_vm1, %v1849_v12, 0.0  ;;  %v1863_v29 = vmax.f32 %v427_v7, %v461_v13 }
  0xf2   : > { %v431_v20 = vpop.f32.mrf.mxu0  ;;  %505 = vadd.xlane.f32.xlu1 %v504_v18  ;;  %508 = vadd.xlane.f32.xlu0 %v507_v19 }
  0xf3   : > { %v432_v21 = vadd.f32 %v431_v20, %v1805_v26  ;;  %v1859_v22 = vmax.f32 %v422_v11, %v460_v16  ;;  %v463_v30 = vmul.f32 0.2, %v437_v17  ;;  %v516_v38 = vsel %vm482_vm1, %v1863_v29, 0.0 }
  0xf4   : > { %v1519_v27 = vpop.f32.mrf.mxu0 }
  0xf5   : > { %v462_v31 = vmul.f32 0.2, %v432_v21  ;;  %v447_v32 = vadd.f32 %v1519_v27, %v1805_v26  ;;  %v513_v33 = vsel %vm482_vm1, %v1859_v22, 0.0  ;;  %v1875_v42 = vmax.f32 %v437_v17, %v463_v30 }
  0xf6   : > { %v441_v34 = vpop.f32.mrf.mxu0  ;;  %511 = vadd.xlane.f32.xlu1 %v510_v28  ;;  %514 = vadd.xlane.f32.xlu0 %v513_v33 }
  0xf7   : > { %v442_v35 = vadd.f32 %v441_v34, %v1805_v26  ;;  %v1869_v36 = vmax.f32 %v432_v21, %v462_v31  ;;  %v465_v39 = vmul.f32 0.2, %v447_v32  ;;  %v522_v45 = vsel %vm482_vm1, %v1875_v42, 0.0 }
  0xf9   : > { %v464_v40 = vmul.f32 0.2, %v442_v35  ;;  %v519_v41 = vsel %vm482_vm1, %v1869_v36, 0.0  ;;  %v1883_v47 = vmax.f32 %v447_v32, %v465_v39 }
  0xfa   : > { %517 = vadd.xlane.f32.xlu1 %v516_v38  ;;  %520 = vadd.xlane.f32.xlu0 %v519_v41 }
  0xfb   : > { %v1877_v44 = vmax.f32 %v442_v35, %v464_v40  ;;  %v528_v48 = vsel %vm482_vm1, %v1883_v47, 0.0 }
  0xfd   : > { %v525_v26 = vsel %vm482_vm1, %v1877_v44, 0.0 }
  0xfe   : > { %523 = vadd.xlane.f32.xlu1 %v522_v45  ;;  %526 = vadd.xlane.f32.xlu0 %v525_v26 }
 0x102   : > { %529 = vadd.xlane.f32.xlu1 %v528_v48 }
 0x16b   : > { %v485_v50 = vpop.xlane.xlu0 %484 }
 0x16c   : > { %v532_v51 = vmul.f32 0.03125, %v485_v50 }
 0x16e   : > { %v1888_v52 = vsub.f32 %v1811_v37, %v532_v51 }
 0x16f   : > { %v491_v53 = vpop.xlane.xlu1 %490  ;;  %v488_v54 = vpop.xlane.xlu0 %487 }
 0x170   : > { %v534_v55 = vmul.f32 0.03125, %v491_v53  ;;  %v533_v57 = vmul.f32 0.03125, %v488_v54  ;;  %v564_v58 = vmul.f32 %v1888_v52, %v1888_v52 }
 0x172   : > { %v1893_v60 = vsub.f32 %v1819_v46, %v534_v55  ;;  %v1896_v61 = vsub.f32 %v1816_v43, %v533_v57  ;;  %v580_v62 = vsel %vm482_vm1, %v564_v58, 0.0 }
 0x173   : > { %v494_v63 = vpop.xlane.xlu1 %493  ;;  %581 = vadd.xlane.f32.xlu0 %v580_v62  ;;  %v497_v0 = vpop.xlane.xlu0 %496 }
 0x174   : > { %v535_v37 = vmul.f32 0.03125, %v494_v63  ;;  %v536_v1 = vmul.f32 0.03125, %v497_v0  ;;  %v566_v3 = vmul.f32 %v1893_v60, %v1893_v60  ;;  %v565_v4 = vmul.f32 %v1896_v61, %v1896_v61 }
 0x176   : > { %v1904_v5 = vsub.f32 %v1821_v49, %v535_v37  ;;  %v1907_v46 = vsub.f32 %v1829_v56, %v536_v1  ;;  %v586_v43 = vsel %vm482_vm1, %v566_v3, 0.0  ;;  %v583_v6 = vsel %vm482_vm1, %v565_v4, 0.0 }
 0x177   : > { %v500_v7 = vpop.xlane.xlu1 %499  ;;  %587 = vadd.xlane.f32.xlu0 %v586_v43  ;;  %584 = vadd.xlane.f32.xlu1 %v583_v6  ;;  %v503_v8 = vpop.xlane.xlu0 %502 }
 0x178   : > { %v537_v10 = vmul.f32 0.03125, %v500_v7  ;;  %v538_v11 = vmul.f32 0.03125, %v503_v8  ;;  %v567_v13 = vmul.f32 %v1904_v5, %v1904_v5  ;;  %v568_v49 = vmul.f32 %v1907_v46, %v1907_v46 }
 0x17a   : > { %v1916_v14 = vsub.f32 %v1833_v59, %v537_v10  ;;  %v1919_v56 = vsub.f32 %v1839_v2, %v538_v11  ;;  %v589_v16 = vsel %vm482_vm1, %v567_v13, 0.0  ;;  %v592_v17 = vsel %vm482_vm1, %v568_v49, 0.0  ;;  %v735_v11 = vld [vmem:[%s2360_s3 + $0x18] sm:$0xff]  ;;  %v733_v49 = vld [vmem:[%s2360_s3 + $0x8] sm:$0xff] }
 0x17b   : > { %v506_v18 = vpop.xlane.xlu1 %505  ;;  %590 = vadd.xlane.f32.xlu1 %v589_v16  ;;  %593 = vadd.xlane.f32.xlu0 %v592_v17  ;;  %v509_v19 = vpop.xlane.xlu0 %508  ;;  %v732_v16 = vld [vmem:[%s2360_s3] sm:$0xff] }
 0x17c   : > { %v539_v20 = vmul.f32 0.03125, %v506_v18  ;;  %v540_v21 = vmul.f32 0.03125, %v509_v19  ;;  %v569_v27 = vmul.f32 %v1916_v14, %v1916_v14  ;;  %v570_v59 = vmul.f32 %v1919_v56, %v1919_v56  ;;  %1520 = vmatprep.subr.mxu1 %v735_v11 }
 0x17d   : > { %1521 = vmatpush3.msra.mxu1 %v735_v11 }
 0x17e   : > { %v1928_v28 = vsub.f32 %v1846_v9, %v539_v20  ;;  %v1931_v2 = vsub.f32 %v1849_v12, %v540_v21  ;;  %v595_v30 = vsel %vm482_vm1, %v569_v27, 0.0  ;;  %v598_v31 = vsel %vm482_vm1, %v570_v59, 0.0 }
 0x17f   : > { %v512_v32 = vpop.xlane.xlu1 %511  ;;  %596 = vadd.xlane.f32.xlu1 %v595_v30  ;;  %599 = vadd.xlane.f32.xlu0 %v598_v31  ;;  %v515_v33 = vpop.xlane.xlu0 %514 }
 0x180   : > { %v541_v34 = vmul.f32 0.03125, %v512_v32  ;;  %v542_v35 = vmul.f32 0.03125, %v515_v33  ;;  %v571_v38 = vmul.f32 %v1928_v28, %v1928_v28  ;;  %v572_v9 = vmul.f32 %v1931_v2, %v1931_v2 }
 0x182   : > { %v1940_v39 = vsub.f32 %v1851_v15, %v541_v34  ;;  %v1943_v12 = vsub.f32 %v1859_v22, %v542_v35  ;;  %v601_v40 = vsel %vm482_vm1, %v571_v38, 0.0  ;;  %v604_v41 = vsel %vm482_vm1, %v572_v9, 0.0 }
 0x183   : > { %v518_v45 = vpop.xlane.xlu1 %517  ;;  %602 = vadd.xlane.f32.xlu1 %v601_v40  ;;  %605 = vadd.xlane.f32.xlu0 %v604_v41  ;;  %v521_v26 = vpop.xlane.xlu0 %520 }
 0x184   : > { %v543_v48 = vmul.f32 0.03125, %v518_v45  ;;  %v544_v50 = vmul.f32 0.03125, %v521_v26  ;;  %v573_v51 = vmul.f32 %v1940_v39, %v1940_v39  ;;  %v574_v15 = vmul.f32 %v1943_v12, %v1943_v12 }
 0x186   : > { %v1952_v53 = vsub.f32 %v1863_v29, %v543_v48  ;;  %v1955_v22 = vsub.f32 %v1869_v36, %v544_v50  ;;  %v607_v54 = vsel %vm482_vm1, %v573_v51, 0.0  ;;  %v610_v55 = vsel %vm482_vm1, %v574_v15, 0.0 }
 0x187   : > { %v524_v57 = vpop.xlane.xlu1 %523  ;;  %608 = vadd.xlane.f32.xlu1 %v607_v54  ;;  %611 = vadd.xlane.f32.xlu0 %v610_v55  ;;  %v527_v58 = vpop.xlane.xlu0 %526  ;;  %v694_v48 = vsub.s32 1, %v1794_v23  ;;  %v714_v15 = vsub.s32 2, %v1794_v23 }
 0x188   : > { %v545_v62 = vmul.f32 0.03125, %v524_v57  ;;  %v546_v63 = vmul.f32 0.03125, %v527_v58  ;;  %v575_v0 = vmul.f32 %v1952_v53, %v1952_v53  ;;  %v576_v29 = vmul.f32 %v1955_v22, %v1955_v22 }
 0x18a   : > { %v1964_v37 = vsub.f32 %v1875_v42, %v545_v62  ;;  %v1967_v36 = vsub.f32 %v1877_v44, %v546_v63  ;;  %v613_v1 = vsel %vm482_vm1, %v575_v0, 0.0  ;;  %v616_v3 = vsel %vm482_vm1, %v576_v29, 0.0 }
 0x18b   : > { %v530_v4 = vpop.xlane.xlu1 %529  ;;  %614 = vadd.xlane.f32.xlu1 %v613_v1  ;;  %617 = vadd.xlane.f32.xlu0 %v616_v3  ;;  %v2000_v62 = vrot.slane %v1800_v25, %v694_v48  ;;  %v2006_v3 = vrot.slane %v1800_v25, %v714_v15 }
 0x18c   : > { %v547_v43 = vmul.f32 0.03125, %v530_v4  ;;  %v577_v6 = vmul.f32 %v1964_v37, %v1964_v37  ;;  %v578_v7 = vmul.f32 %v1967_v36, %v1967_v36 }
 0x18e   : > { %v1976_v42 = vsub.f32 %v1883_v47, %v547_v43  ;;  %v619_v44 = vsel %vm482_vm1, %v577_v6, 0.0  ;;  %v622_v8 = vsel %vm482_vm1, %v578_v7, 0.0  ;;  %v734_v47 = vld [vmem:[%s2360_s3 + $0x10] sm:$0xff] }
 0x18f   : > { %620 = vadd.xlane.f32.xlu1 %v619_v44  ;;  %623 = vadd.xlane.f32.xlu0 %v622_v8 }
 0x190   : > { %v579_v10 = vmul.f32 %v1976_v42, %v1976_v42  ;;  %1522 = vmatprep.subr.mxu1 %v734_v47 }
 0x191   : > { %1523 = vmatpush3.msra.mxu1 %v734_v47 }
 0x192   : > { %v625_v13 = vsel %vm482_vm1, %v579_v10, 0.0  ;;  %1524 = vmatprep.subr.mxu1 %v733_v49 }
 0x193   : > { %626 = vadd.xlane.f32.xlu1 %v625_v13  ;;  %1525 = vmatpush3.msra.mxu1 %v733_v49 }
 0x194   : > { %1526 = vmatprep.subr.mxu1 %v732_v16 }
 0x195   : > { %1527 = vmatpush3.msra.mxu1 %v732_v16 }
 0x1fc   : > { %v582_v17 = vpop.xlane.xlu0 %581 }
 0x1fd   : > { %v628_v18 = vmul.f32 0.03125, %v582_v17 }
 0x1ff   : > { %v644_v19 = vadd.f32 1e-05, %v628_v18 }
 0x200   : > { %v585_v20 = vpop.xlane.xlu1 %584  ;;  %v588_v21 = vpop.xlane.xlu0 %587 }
 0x201   : > { %1560 = vrsqrt.f32 %v644_v19  ;;  %v629_v27 = vmul.f32 0.03125, %v585_v20  ;;  %v630_v59 = vmul.f32 0.03125, %v588_v21 }
 0x203   : > { %v645_v30 = vadd.f32 1e-05, %v629_v27  ;;  %v646_v31 = vadd.f32 1e-05, %v630_v59 }
 0x204   : > { %v591_v32 = vpop.xlane.xlu1 %590  ;;  %v594_v33 = vpop.xlane.xlu0 %593 }
 0x205   : > { %1562 = vrsqrt.f32 %v645_v30  ;;  %v631_v34 = vmul.f32 0.03125, %v591_v32  ;;  %v632_v35 = vmul.f32 0.03125, %v594_v33 }
 0x206   : > { %1564 = vrsqrt.f32 %v646_v31 }
 0x207   : > { %v647_v38 = vadd.f32 1e-05, %v631_v34  ;;  %v648_v9 = vadd.f32 1e-05, %v632_v35 }
 0x208   : > { %v597_v40 = vpop.xlane.xlu1 %596  ;;  %v600_v41 = vpop.xlane.xlu0 %599 }
 0x209   : > { %1566 = vrsqrt.f32 %v647_v38  ;;  %v633_v45 = vmul.f32 0.03125, %v597_v40  ;;  %v634_v26 = vmul.f32 0.03125, %v600_v41 }
 0x20a   : > { %1568 = vrsqrt.f32 %v648_v9 }
 0x20b   : > { %v649_v50 = vadd.f32 1e-05, %v633_v45  ;;  %v650_v51 = vadd.f32 1e-05, %v634_v26 }
 0x20c   : > { %v603_v54 = vpop.xlane.xlu1 %602  ;;  %v606_v55 = vpop.xlane.xlu0 %605 }
 0x20d   : > { %1570 = vrsqrt.f32 %v649_v50  ;;  %v635_v57 = vmul.f32 0.03125, %v603_v54  ;;  %v636_v58 = vmul.f32 0.03125, %v606_v55 }
 0x20e   : > { %v1561_v63 = vpop.eup %1560  ;;  %1572 = vrsqrt.f32 %v650_v51 }
 0x20f   : > { %v651_v0 = vadd.f32 1e-05, %v635_v57  ;;  %v652_v29 = vadd.f32 1e-05, %v636_v58  ;;  %v676_v1 = vmul.f32 %v1561_v63, %v1888_v52 }
 0x210   : > { %v609_v4 = vpop.xlane.xlu1 %608  ;;  %v612_v43 = vpop.xlane.xlu0 %611 }
 0x211   : > { %1574 = vrsqrt.f32 %v651_v0  ;;  %v637_v6 = vmul.f32 0.03125, %v609_v4  ;;  %v638_v7 = vmul.f32 0.03125, %v612_v43  ;;  %v696_v44 = vmul.f32 %v2000_v62, %v676_v1 }
 0x212   : > { %v1563_v8 = vpop.eup %1562  ;;  %1576 = vrsqrt.f32 %v652_v29 }
 0x213   : > { %v1565_v10 = vpop.eup %1564  ;;  %v653_v11 = vadd.f32 1e-05, %v637_v6  ;;  %v654_v13 = vadd.f32 1e-05, %v638_v7  ;;  %v716_v47 = vadd.f32 %v2006_v3, %v696_v44  ;;  %v677_v52 = vmul.f32 %v1563_v8, %v1896_v61 }
 0x214   : > { %v615_v49 = vpop.xlane.xlu1 %614  ;;  %v618_v16 = vpop.xlane.xlu0 %617  ;;  %v678_v25 = vmul.f32 %v1565_v10, %v1893_v60 }
 0x215   : > { %1578 = vrsqrt.f32 %v653_v11  ;;  %v639_v17 = vmul.f32 0.03125, %v615_v49  ;;  %v640_v18 = vmul.f32 0.03125, %v618_v16  ;;  %1528 = vmatprep.mubr.msk.f32.mxu1 %vm482_vm1, %v716_v47  ;;  %v697_v19 = vmul.f32 %v2000_v62, %v677_v52 }
 0x216   : > { %v1567_v20 = vpop.eup %1566  ;;  %1580 = vrsqrt.f32 %v654_v13  ;;  %v698_v21 = vmul.f32 %v2000_v62, %v678_v25 }
 0x217   : > { %v1569_v27 = vpop.eup %1568  ;;  %v655_v59 = vadd.f32 1e-05, %v639_v17  ;;  %v656_v30 = vadd.f32 1e-05, %v640_v18  ;;  %v717_v61 = vadd.f32 %v2006_v3, %v697_v19  ;;  %v679_v31 = vmul.f32 %v1567_v20, %v1904_v5 }
 0x218   : > { %v621_v32 = vpop.xlane.xlu1 %620  ;;  %v624_v60 = vpop.xlane.xlu0 %623  ;;  %v718_v33 = vadd.f32 %v2006_v3, %v698_v21  ;;  %v680_v34 = vmul.f32 %v1569_v27, %v1907_v46 }
 0x219   : > { %1582 = vrsqrt.f32 %v655_v59  ;;  %v641_v35 = vmul.f32 0.03125, %v621_v32  ;;  %v642_v38 = vmul.f32 0.03125, %v624_v60  ;;  %1529 = vmatmul.mubr.msk.f32.vlgmr.msra.gmra.mxu1 %vm482_vm1, %v717_v61  ;;  %v699_v9 = vmul.f32 %v2000_v62, %v679_v31 }
 0x21a   : > { %v1571_v40 = vpop.eup %1570  ;;  %1584 = vrsqrt.f32 %v656_v30  ;;  %1531 = vmatprep.mubr.msk.f32.mxu1 %vm482_vm1, %v718_v33  ;;  %v700_v41 = vmul.f32 %v2000_v62, %v680_v34  ;;  %v2074_v33 = vld [vmem:[%s2361_s4] sm:$0x7] }
 0x21b   : > { %v1573_v5 = vpop.eup %1572  ;;  %v657_v45 = vadd.f32 1e-05, %v641_v35  ;;  %v658_v26 = vadd.f32 1e-05, %v642_v38  ;;  %v719_v50 = vadd.f32 %v2006_v3, %v699_v9  ;;  %v681_v46 = vmul.f32 %v1571_v40, %v1916_v14 }
 0x21c   : > { %v627_v51 = vpop.xlane.xlu1 %626  ;;  %v720_v54 = vadd.f32 %v2006_v3, %v700_v41  ;;  %v682_v55 = vmul.f32 %v1573_v5, %v1919_v56 }
 0x21d   : > { %1586 = vrsqrt.f32 %v657_v45  ;;  %v643_v57 = vmul.f32 0.03125, %v627_v51  ;;  %1532 = vmatmul.mubr.msk.f32.gmra.mxu1 %vm482_vm1, %v719_v50  ;;  %v701_v58 = vmul.f32 %v2000_v62, %v681_v46 }
 0x21e   : > { %v1575_v63 = vpop.eup %1574  ;;  %1588 = vrsqrt.f32 %v658_v26  ;;  %1534 = vmatprep.mubr.msk.f32.mxu1 %vm482_vm1, %v720_v54  ;;  %v702_v0 = vmul.f32 %v2000_v62, %v682_v55 }
 0x21f   : > { %v1577_v29 = vpop.eup %1576  ;;  %v659_v1 = vadd.f32 1e-05, %v643_v57  ;;  %v721_v14 = vadd.f32 %v2006_v3, %v701_v58  ;;  %v683_v4 = vmul.f32 %v1575_v63, %v1928_v28 }
 0x220   : > { %v722_v56 = vadd.f32 %v2006_v3, %v702_v0  ;;  %v684_v43 = vmul.f32 %v1577_v29, %v1931_v2 }
 0x221   : > { %1590 = vrsqrt.f32 %v659_v1  ;;  %1535 = vmatmul.mubr.msk.f32.gmra.mxu1 %vm482_vm1, %v721_v14  ;;  %v703_v6 = vmul.f32 %v2000_v62, %v683_v4 }
 0x222   : > { %v1579_v7 = vpop.eup %1578  ;;  %1537 = vmatprep.mubr.msk.f32.mxu1 %vm482_vm1, %v722_v56  ;;  %v704_v44 = vmul.f32 %v2000_v62, %v684_v43 }
 0x223   : > { %v1581_v8 = vpop.eup %1580  ;;  %v723_v10 = vadd.f32 %v2006_v3, %v703_v6  ;;  %v685_v11 = vmul.f32 %v1579_v7, %v1940_v39 }
 0x224   : > { %v724_v28 = vadd.f32 %v2006_v3, %v704_v44  ;;  %v686_v13 = vmul.f32 %v1581_v8, %v1943_v12 }
 0x225   : > { %1538 = vmatmul.mubr.msk.f32.gmra.mxu1 %vm482_vm1, %v723_v10  ;;  %v705_v2 = vmul.f32 %v2000_v62, %v685_v11 }
 0x226   : > { %v1583_v47 = vpop.eup %1582  ;;  %1540 = vmatprep.mubr.msk.f32.mxu1 %vm482_vm1, %v724_v28  ;;  %v706_v52 = vmul.f32 %v2000_v62, %v686_v13 }
 0x227   : > { %v1585_v49 = vpop.eup %1584  ;;  %v725_v16 = vadd.f32 %v2006_v3, %v705_v2  ;;  %v687_v25 = vmul.f32 %v1583_v47, %v1952_v53 }
 0x228   : > { %v726_v39 = vadd.f32 %v2006_v3, %v706_v52  ;;  %v688_v17 = vmul.f32 %v1585_v49, %v1955_v22 }
 0x229   : > { %1541 = vmatmul.mubr.msk.f32.gmra.mxu1 %vm482_vm1, %v725_v16  ;;  %v707_v12 = vmul.f32 %v2000_v62, %v687_v25 }
 0x22a   : > { %v1587_v18 = vpop.eup %1586  ;;  %1543 = vmatprep.mubr.msk.f32.mxu1 %vm482_vm1, %v726_v39  ;;  %v708_v19 = vmul.f32 %v2000_v62, %v688_v17 }
 0x22b   : > { %v1589_v20 = vpop.eup %1588  ;;  %v727_v21 = vadd.f32 %v2006_v3, %v707_v12  ;;  %v689_v27 = vmul.f32 %v1587_v18, %v1964_v37 }
 0x22c   : > { %v728_v53 = vadd.f32 %v2006_v3, %v708_v19  ;;  %v690_v59 = vmul.f32 %v1589_v20, %v1967_v36 }
 0x22d   : > { %1544 = vmatmul.mubr.msk.f32.gmra.mxu1 %vm482_vm1, %v727_v21  ;;  %v709_v22 = vmul.f32 %v2000_v62, %v689_v27 }
 0x22e   : > { %v1591_v30 = vpop.eup %1590  ;;  %1546 = vmatprep.mubr.msk.f32.mxu1 %vm482_vm1, %v728_v53  ;;  %v710_v61 = vmul.f32 %v2000_v62, %v690_v59 }
 0x22f   : > { %v729_v31 = vadd.f32 %v2006_v3, %v709_v22  ;;  %v691_v32 = vmul.f32 %v1591_v30, %v1976_v42  ;;  %v2079_v42 = vrot.slane %v2074_v33, %v254_v24 }
 0x230   : > { %v730_v60 = vadd.f32 %v2006_v3, %v710_v61 }
 0x231   : > { %1547 = vmatmul.mubr.msk.f32.gmra.mxu1 %vm482_vm1, %v729_v31  ;;  %v711_v37 = vmul.f32 %v2000_v62, %v691_v32 }
 0x232   : > { %1549 = vmatprep.mubr.msk.f32.mxu1 %vm482_vm1, %v730_v60 }
 0x233   : > { %v731_v36 = vadd.f32 %v2006_v3, %v711_v37 }
 0x235   : > { %1550 = vmatmul.mubr.msk.f32.gmra.mxu1 %vm482_vm1, %v731_v36 }
 0x2d9   : > { %v1530_v34 = vpop.f32.mrf.mxu1 }
 0x2da   : > { %v860_v35 = vadd.f32 %v1530_v34, %v2079_v42 }
 0x2db   : > { %v854_v62 = vpop.f32.mrf.mxu1 }
 0x2dc   : > { %v934_v38 = vmul.f32 0.2, %v860_v35  ;;  %v855_v9 = vadd.f32 %v854_v62, %v2079_v42 }
 0x2dd   : > { %v1533_v3 = vpop.f32.mrf.mxu1 }
 0x2de   : > { %v933_v40 = vmul.f32 0.2, %v855_v9  ;;  %v870_v41 = vadd.f32 %v1533_v3, %v2079_v42  ;;  %v2084_v5 = vmax.f32 %v860_v35, %v934_v38 }
 0x2df   : > { %v864_v45 = vpop.f32.mrf.mxu1 }
 0x2e0   : > { %v936_v26 = vmul.f32 0.2, %v870_v41  ;;  %v865_v50 = vadd.f32 %v864_v45, %v2079_v42  ;;  %v969_v24 = vsel %vm965_vm2, %v2084_v5, 0.0  ;;  %v2089_v46 = vmax.f32 %v855_v9, %v933_v40 }
 0x2e1   : > { %970 = vadd.xlane.f32.xlu1 %v969_v24  ;;  %v1536_v51 = vpop.f32.mrf.mxu1 }
 0x2e2   : > { %v935_v54 = vmul.f32 0.2, %v865_v50  ;;  %v880_v55 = vadd.f32 %v1536_v51, %v2079_v42  ;;  %v966_v57 = vsel %vm965_vm2, %v2089_v46, 0.0  ;;  %v2094_v58 = vmax.f32 %v870_v41, %v936_v26 }
 0x2e3   : > { %967 = vadd.xlane.f32.xlu0 %v966_v57  ;;  %v874_v63 = vpop.f32.mrf.mxu1 }
 0x2e4   : > { %v938_v0 = vmul.f32 0.2, %v880_v55  ;;  %v875_v29 = vadd.f32 %v874_v63, %v2079_v42  ;;  %v975_v1 = vsel %vm965_vm2, %v2094_v58, 0.0  ;;  %v2099_v14 = vmax.f32 %v865_v50, %v935_v54 }
 0x2e5   : > { %976 = vadd.xlane.f32.xlu1 %v975_v1  ;;  %v1539_v4 = vpop.f32.mrf.mxu1 }
 0x2e6   : > { %v937_v56 = vmul.f32 0.2, %v875_v29  ;;  %v890_v43 = vadd.f32 %v1539_v4, %v2079_v42  ;;  %v972_v6 = vsel %vm965_vm2, %v2099_v14, 0.0  ;;  %v2104_v7 = vmax.f32 %v880_v55, %v938_v0 }
 0x2e7   : > { %973 = vadd.xlane.f32.xlu0 %v972_v6  ;;  %v884_v44 = vpop.f32.mrf.mxu1 }
 0x2e8   : > { %v940_v8 = vmul.f32 0.2, %v890_v43  ;;  %v885_v10 = vadd.f32 %v884_v44, %v2079_v42  ;;  %v981_v11 = vsel %vm965_vm2, %v2104_v7, 0.0  ;;  %v2109_v28 = vmax.f32 %v875_v29, %v937_v56 }
 0x2e9   : > { %982 = vadd.xlane.f32.xlu1 %v981_v11  ;;  %v1542_v13 = vpop.f32.mrf.mxu1 }
 0x2ea   : > { %v939_v2 = vmul.f32 0.2, %v885_v10  ;;  %v900_v47 = vadd.f32 %v1542_v13, %v2079_v42  ;;  %v978_v52 = vsel %vm965_vm2, %v2109_v28, 0.0  ;;  %v2114_v49 = vmax.f32 %v890_v43, %v940_v8 }
 0x2eb   : > { %979 = vadd.xlane.f32.xlu0 %v978_v52  ;;  %v894_v16 = vpop.f32.mrf.mxu1 }
 0x2ec   : > { %v942_v25 = vmul.f32 0.2, %v900_v47  ;;  %v895_v39 = vadd.f32 %v894_v16, %v2079_v42  ;;  %v987_v17 = vsel %vm965_vm2, %v2114_v49, 0.0  ;;  %v2119_v12 = vmax.f32 %v885_v10, %v939_v2 }
 0x2ed   : > { %988 = vadd.xlane.f32.xlu1 %v987_v17  ;;  %v1545_v18 = vpop.f32.mrf.mxu1 }
 0x2ee   : > { %v941_v19 = vmul.f32 0.2, %v895_v39  ;;  %v910_v20 = vadd.f32 %v1545_v18, %v2079_v42  ;;  %v984_v21 = vsel %vm965_vm2, %v2119_v12, 0.0  ;;  %v2124_v27 = vmax.f32 %v900_v47, %v942_v25 }
 0x2ef   : > { %985 = vadd.xlane.f32.xlu0 %v984_v21  ;;  %v904_v53 = vpop.f32.mrf.mxu1 }
 0x2f0   : > { %v944_v59 = vmul.f32 0.2, %v910_v20  ;;  %v905_v22 = vadd.f32 %v904_v53, %v2079_v42  ;;  %v993_v30 = vsel %vm965_vm2, %v2124_v27, 0.0  ;;  %v2129_v61 = vmax.f32 %v895_v39, %v941_v19 }
 0x2f1   : > { %994 = vadd.xlane.f32.xlu1 %v993_v30  ;;  %v1548_v31 = vpop.f32.mrf.mxu1 }
 0x2f2   : > { %v943_v32 = vmul.f32 0.2, %v905_v22  ;;  %v920_v60 = vadd.f32 %v1548_v31, %v2079_v42  ;;  %v990_v37 = vsel %vm965_vm2, %v2129_v61, 0.0  ;;  %v2134_v36 = vmax.f32 %v910_v20, %v944_v59 }
 0x2f3   : > { %991 = vadd.xlane.f32.xlu0 %v990_v37  ;;  %v914_v34 = vpop.f32.mrf.mxu1 }
 0x2f4   : > { %v946_v35 = vmul.f32 0.2, %v920_v60  ;;  %v915_v62 = vadd.f32 %v914_v34, %v2079_v42  ;;  %v999_v38 = vsel %vm965_vm2, %v2134_v36, 0.0  ;;  %v2139_v9 = vmax.f32 %v905_v22, %v943_v32 }
 0x2f5   : > { %1000 = vadd.xlane.f32.xlu1 %v999_v38  ;;  %v1551_v3 = vpop.f32.mrf.mxu1 }
 0x2f6   : > { %v945_v40 = vmul.f32 0.2, %v915_v62  ;;  %v930_v41 = vadd.f32 %v1551_v3, %v2079_v42  ;;  %v996_v45 = vsel %vm965_vm2, %v2139_v9, 0.0  ;;  %v2144_v26 = vmax.f32 %v920_v60, %v946_v35 }
 0x2f7   : > { %997 = vadd.xlane.f32.xlu0 %v996_v45  ;;  %v924_v50 = vpop.f32.mrf.mxu1 }
 0x2f8   : > { %v948_v24 = vmul.f32 0.2, %v930_v41  ;;  %v925_v51 = vadd.f32 %v924_v50, %v2079_v42  ;;  %v1005_v54 = vsel %vm965_vm2, %v2144_v26, 0.0  ;;  %v2149_v55 = vmax.f32 %v915_v62, %v945_v40 }
 0x2f9   : > { %1006 = vadd.xlane.f32.xlu1 %v1005_v54 }
 0x2fa   : > { %v947_v57 = vmul.f32 0.2, %v925_v51  ;;  %v1002_v63 = vsel %vm965_vm2, %v2149_v55, 0.0  ;;  %v2153_v0 = vmax.f32 %v930_v41, %v948_v24 }
 0x2fb   : > { %1003 = vadd.xlane.f32.xlu0 %v1002_v63 }
 0x2fc   : > { %v1011_v29 = vsel %vm965_vm2, %v2153_v0, 0.0  ;;  %v2157_v1 = vmax.f32 %v925_v51, %v947_v57 }
 0x2fd   : > { %1012 = vadd.xlane.f32.xlu1 %v1011_v29 }
 0x2fe   : > { %v1008_v42 = vsel %vm965_vm2, %v2157_v1, 0.0 }
 0x2ff   : > { %1009 = vadd.xlane.f32.xlu0 %v1008_v42 }
 0x36a   : > { %v971_v4 = vpop.xlane.xlu1 %970 }
 0x36b   : > { %v1016_v56 = vmul.f32 0.0625, %v971_v4 }
 0x36c   : > { %v968_v43 = vpop.xlane.xlu0 %967 }
 0x36d   : > { %v2162_v6 = vsub.f32 %v2084_v5, %v1016_v56  ;;  %v1015_v44 = vmul.f32 0.0625, %v968_v43 }
 0x36e   : > { %v977_v8 = vpop.xlane.xlu1 %976 }
 0x36f   : > { %v2165_v10 = vsub.f32 %v2089_v46, %v1015_v44  ;;  %v1018_v11 = vmul.f32 0.0625, %v977_v8  ;;  %v1048_v13 = vmul.f32 %v2162_v6, %v2162_v6 }
 0x370   : > { %v974_v2 = vpop.xlane.xlu0 %973 }
 0x371   : > { %v2170_v47 = vsub.f32 %v2094_v58, %v1018_v11  ;;  %v1017_v52 = vmul.f32 0.0625, %v974_v2  ;;  %v1066_v16 = vsel %vm965_vm2, %v1048_v13, 0.0  ;;  %v1047_v5 = vmul.f32 %v2165_v10, %v2165_v10 }
 0x372   : > { %v983_v25 = vpop.xlane.xlu1 %982  ;;  %1067 = vadd.xlane.f32.xlu1 %v1066_v16 }
 0x373   : > { %v2176_v39 = vsub.f32 %v2099_v14, %v1017_v52  ;;  %v1020_v46 = vmul.f32 0.0625, %v983_v25  ;;  %v1063_v17 = vsel %vm965_vm2, %v1047_v5, 0.0  ;;  %v1050_v18 = vmul.f32 %v2170_v47, %v2170_v47 }
 0x374   : > { %1064 = vadd.xlane.f32.xlu0 %v1063_v17  ;;  %v980_v58 = vpop.xlane.xlu0 %979 }
 0x375   : > { %v2182_v19 = vsub.f32 %v2104_v7, %v1020_v46  ;;  %v1019_v20 = vmul.f32 0.0625, %v980_v58  ;;  %v1072_v21 = vsel %vm965_vm2, %v1050_v18, 0.0  ;;  %v1049_v53 = vmul.f32 %v2176_v39, %v2176_v39 }
 0x376   : > { %v989_v59 = vpop.xlane.xlu1 %988  ;;  %1073 = vadd.xlane.f32.xlu1 %v1072_v21 }
 0x377   : > { %v2188_v14 = vsub.f32 %v2109_v28, %v1019_v20  ;;  %v1022_v22 = vmul.f32 0.0625, %v989_v59  ;;  %v1069_v30 = vsel %vm965_vm2, %v1049_v53, 0.0  ;;  %v1052_v31 = vmul.f32 %v2182_v19, %v2182_v19 }
 0x378   : > { %1070 = vadd.xlane.f32.xlu0 %v1069_v30  ;;  %v986_v7 = vpop.xlane.xlu0 %985 }
 0x379   : > { %v2194_v32 = vsub.f32 %v2114_v49, %v1022_v22  ;;  %v1021_v60 = vmul.f32 0.0625, %v986_v7  ;;  %v1078_v37 = vsel %vm965_vm2, %v1052_v31, 0.0  ;;  %v1051_v34 = vmul.f32 %v2188_v14, %v2188_v14 }
 0x37a   : > { %v995_v35 = vpop.xlane.xlu1 %994  ;;  %1079 = vadd.xlane.f32.xlu1 %v1078_v37 }
 0x37b   : > { %v2200_v28 = vsub.f32 %v2119_v12, %v1021_v60  ;;  %v1024_v62 = vmul.f32 0.0625, %v995_v35  ;;  %v1075_v38 = vsel %vm965_vm2, %v1051_v34, 0.0  ;;  %v1054_v3 = vmul.f32 %v2194_v32, %v2194_v32 }
 0x37c   : > { %1076 = vadd.xlane.f32.xlu0 %v1075_v38  ;;  %v992_v49 = vpop.xlane.xlu0 %991 }
 0x37d   : > { %v2206_v40 = vsub.f32 %v2124_v27, %v1024_v62  ;;  %v1023_v41 = vmul.f32 0.0625, %v992_v49  ;;  %v1084_v45 = vsel %vm965_vm2, %v1054_v3, 0.0  ;;  %v1053_v50 = vmul.f32 %v2200_v28, %v2200_v28 }
 0x37e   : > { %v1001_v24 = vpop.xlane.xlu1 %1000  ;;  %1085 = vadd.xlane.f32.xlu1 %v1084_v45 }
 0x37f   : > { %v2212_v12 = vsub.f32 %v2129_v61, %v1023_v41  ;;  %v1026_v51 = vmul.f32 0.0625, %v1001_v24  ;;  %v1081_v54 = vsel %vm965_vm2, %v1053_v50, 0.0  ;;  %v1056_v57 = vmul.f32 %v2206_v40, %v2206_v40 }
 0x380   : > { %1082 = vadd.xlane.f32.xlu0 %v1081_v54  ;;  %v998_v27 = vpop.xlane.xlu0 %997 }
 0x381   : > { %v2218_v63 = vsub.f32 %v2134_v36, %v1026_v51  ;;  %v1025_v29 = vmul.f32 0.0625, %v998_v27  ;;  %v1090_v42 = vsel %vm965_vm2, %v1056_v57, 0.0  ;;  %v1055_v4 = vmul.f32 %v2212_v12, %v2212_v12 }
 0x382   : > { %v1007_v56 = vpop.xlane.xlu1 %1006  ;;  %1091 = vadd.xlane.f32.xlu1 %v1090_v42 }
 0x383   : > { %v2224_v61 = vsub.f32 %v2139_v9, %v1025_v29  ;;  %v1028_v43 = vmul.f32 0.0625, %v1007_v56  ;;  %v1087_v44 = vsel %vm965_vm2, %v1055_v4, 0.0  ;;  %v1058_v8 = vmul.f32 %v2218_v63, %v2218_v63 }
 0x384   : > { %1088 = vadd.xlane.f32.xlu0 %v1087_v44  ;;  %v1004_v36 = vpop.xlane.xlu0 %1003 }
 0x385   : > { %v2230_v11 = vsub.f32 %v2144_v26, %v1028_v43  ;;  %v1027_v13 = vmul.f32 0.0625, %v1004_v36  ;;  %v1096_v2 = vsel %vm965_vm2, %v1058_v8, 0.0  ;;  %v1057_v52 = vmul.f32 %v2224_v61, %v2224_v61 }
 0x386   : > { %1097 = vadd.xlane.f32.xlu1 %v1096_v2  ;;  %v1013_v9 = vpop.xlane.xlu1 %1012  ;;  %v2260_v43 = vrot.slane %v2074_v33, %v694_v48 }
 0x387   : > { %v2236_v16 = vsub.f32 %v2149_v55, %v1027_v13  ;;  %v1030_v5 = vmul.f32 0.0625, %v1013_v9  ;;  %v1093_v25 = vsel %vm965_vm2, %v1057_v52, 0.0  ;;  %v1060_v46 = vmul.f32 %v2230_v11, %v2230_v11 }
 0x388   : > { %1094 = vadd.xlane.f32.xlu0 %v1093_v25  ;;  %v1010_v26 = vpop.xlane.xlu0 %1009  ;;  %v2265_v13 = vrot.slane %v2074_v33, %v714_v15 }
 0x389   : > { %v2242_v17 = vsub.f32 %v2153_v0, %v1030_v5  ;;  %v1029_v18 = vmul.f32 0.0625, %v1010_v26  ;;  %v1102_v58 = vsel %vm965_vm2, %v1060_v46, 0.0  ;;  %v1059_v20 = vmul.f32 %v2236_v16, %v2236_v16 }
 0x38a   : > { %1103 = vadd.xlane.f32.xlu1 %v1102_v58 }
 0x38b   : > { %v2248_v55 = vsub.f32 %v2157_v1, %v1029_v18  ;;  %v1099_v21 = vsel %vm965_vm2, %v1059_v20, 0.0  ;;  %v1062_v53 = vmul.f32 %v2242_v17, %v2242_v17 }
 0x38c   : > { %1100 = vadd.xlane.f32.xlu0 %v1099_v21 }
 0x38d   : > { %v1108_v59 = vsel %vm965_vm2, %v1062_v53, 0.0  ;;  %v1061_v0 = vmul.f32 %v2248_v55, %v2248_v55 }
 0x38e   : > { %1109 = vadd.xlane.f32.xlu1 %v1108_v59 }
 0x38f   : > { %v1105_v22 = vsel %vm965_vm2, %v1061_v0, 0.0 }
 0x390   : > { %1106 = vadd.xlane.f32.xlu0 %v1105_v22 }
 0x3fb   : > { %v1068_v30 = vpop.xlane.xlu1 %1067 }
 0x3fc   : > { %v1112_v31 = vmul.f32 0.0625, %v1068_v30 }
 0x3fd   : > { %v1065_v7 = vpop.xlane.xlu0 %1064 }
 0x3fe   : > { %v1128_v1 = vadd.f32 1e-05, %v1112_v31  ;;  %v1111_v60 = vmul.f32 0.0625, %v1065_v7 }
 0x3ff   : > { %v1074_v37 = vpop.xlane.xlu1 %1073 }
 0x400   : > { %1592 = vrsqrt.f32 %v1128_v1  ;;  %v1127_v34 = vadd.f32 1e-05, %v1111_v60  ;;  %v1114_v35 = vmul.f32 0.0625, %v1074_v37 }
 0x401   : > { %v1071_v62 = vpop.xlane.xlu0 %1070 }
 0x402   : > { %1594 = vrsqrt.f32 %v1127_v34  ;;  %v1130_v38 = vadd.f32 1e-05, %v1114_v35  ;;  %v1113_v3 = vmul.f32 0.0625, %v1071_v62 }
 0x403   : > { %v1080_v49 = vpop.xlane.xlu1 %1079 }
 0x404   : > { %1596 = vrsqrt.f32 %v1130_v38  ;;  %v1129_v41 = vadd.f32 1e-05, %v1113_v3  ;;  %v1116_v45 = vmul.f32 0.0625, %v1080_v49 }
 0x405   : > { %v1077_v50 = vpop.xlane.xlu0 %1076 }
 0x406   : > { %1598 = vrsqrt.f32 %v1129_v41  ;;  %v1132_v24 = vadd.f32 1e-05, %v1116_v45  ;;  %v1115_v51 = vmul.f32 0.0625, %v1077_v50 }
 0x407   : > { %v1086_v54 = vpop.xlane.xlu1 %1085 }
 0x408   : > { %1600 = vrsqrt.f32 %v1132_v24  ;;  %v1131_v57 = vadd.f32 1e-05, %v1115_v51  ;;  %v1118_v27 = vmul.f32 0.0625, %v1086_v54 }
 0x409   : > { %v1083_v29 = vpop.xlane.xlu0 %1082 }
 0x40a   : > { %1602 = vrsqrt.f32 %v1131_v57  ;;  %v1134_v42 = vadd.f32 1e-05, %v1118_v27  ;;  %v1117_v4 = vmul.f32 0.0625, %v1083_v29 }
 0x40b   : > { %v1092_v56 = vpop.xlane.xlu1 %1091 }
 0x40c   : > { %1604 = vrsqrt.f32 %v1134_v42  ;;  %v1133_v44 = vadd.f32 1e-05, %v1117_v4  ;;  %v1120_v8 = vmul.f32 0.0625, %v1092_v56 }
 0x40d   : > { %v1593_v36 = vpop.eup %1592  ;;  %v1089_v2 = vpop.xlane.xlu0 %1088 }
 0x40e   : > { %v1160_v52 = vmul.f32 %v1593_v36, %v2162_v6  ;;  %1606 = vrsqrt.f32 %v1133_v44  ;;  %v1136_v9 = vadd.f32 1e-05, %v1120_v8  ;;  %v1119_v5 = vmul.f32 0.0625, %v1089_v2 }
 0x40f   : > { %v1595_v25 = vpop.eup %1594  ;;  %v1098_v46 = vpop.xlane.xlu1 %1097 }
 0x410   : > { %v1180_v48 = vmul.f32 %v2260_v43, %v1160_v52  ;;  %v1159_v26 = vmul.f32 %v1595_v25, %v2165_v10  ;;  %1608 = vrsqrt.f32 %v1136_v9  ;;  %v1135_v18 = vadd.f32 1e-05, %v1119_v5 }
 0x411   : > { %v1597_v58 = vpop.eup %1596  ;;  %v1122_v20 = vmul.f32 0.0625, %v1098_v46  ;;  %v1095_v23 = vpop.xlane.xlu0 %1094 }
 0x412   : > { %v1200_v15 = vadd.f32 %v2265_v13, %v1180_v48  ;;  %v1179_v33 = vmul.f32 %v2260_v43, %v1159_v26  ;;  %v1162_v6 = vmul.f32 %v1597_v58, %v2170_v47  ;;  %1610 = vrsqrt.f32 %v1135_v18 }
 0x413   : > { %v1599_v21 = vpop.eup %1598  ;;  %v1138_v53 = vadd.f32 1e-05, %v1122_v20  ;;  %v1121_v59 = vmul.f32 0.0625, %v1095_v23  ;;  %v1104_v0 = vpop.xlane.xlu1 %1103 }
 0x414   : > { %v1425_v22 = vmul.f32 -1.442695, %v1200_v15  ;;  %v1199_v30 = vadd.f32 %v2265_v13, %v1179_v33  ;;  %v1182_v10 = vmul.f32 %v2260_v43, %v1162_v6  ;;  %v1161_v31 = vmul.f32 %v1599_v21, %v2176_v39 }
 0x415   : > { %v1601_v7 = vpop.eup %1600  ;;  %1612 = vrsqrt.f32 %v1138_v53  ;;  %v1137_v1 = vadd.f32 1e-05, %v1121_v59  ;;  %v1124_v60 = vmul.f32 0.0625, %v1104_v0  ;;  %v1101_v37 = vpop.xlane.xlu0 %1100 }
 0x416   : > { %1614 = vpow2.f32 %v1425_v22  ;;  %v1424_v34 = vmul.f32 -1.442695, %v1199_v30  ;;  %v1202_v47 = vadd.f32 %v2265_v13, %v1182_v10  ;;  %v1181_v35 = vmul.f32 %v2260_v43, %v1161_v31 }
 0x417   : > { %v1603_v62 = vpop.eup %1602  ;;  %v1164_v38 = vmul.f32 %v1601_v7, %v2182_v19  ;;  %1616 = vrsqrt.f32 %v1137_v1  ;;  %v1140_v3 = vadd.f32 1e-05, %v1124_v60  ;;  %v1123_v49 = vmul.f32 0.0625, %v1101_v37  ;;  %v1110_v41 = vpop.xlane.xlu1 %1109 }
 0x418   : > { %1618 = vpow2.f32 %v1424_v34  ;;  %v1427_v39 = vmul.f32 -1.442695, %v1202_v47  ;;  %v1201_v45 = vadd.f32 %v2265_v13, %v1181_v35  ;;  %v1163_v50 = vmul.f32 %v1603_v62, %v2188_v14 }
 0x419   : > { %v1605_v24 = vpop.eup %1604  ;;  %v1184_v51 = vmul.f32 %v2260_v43, %v1164_v38  ;;  %1620 = vrsqrt.f32 %v1140_v3  ;;  %v1139_v54 = vadd.f32 1e-05, %v1123_v49  ;;  %v1126_v57 = vmul.f32 0.0625, %v1110_v41  ;;  %v1107_v27 = vpop.xlane.xlu0 %1106 }
 0x41a   : > { %1622 = vpow2.f32 %v1427_v39  ;;  %v1426_v29 = vmul.f32 -1.442695, %v1201_v45  ;;  %v1183_v19 = vmul.f32 %v2260_v43, %v1163_v50  ;;  %v1166_v42 = vmul.f32 %v1605_v24, %v2194_v32 }
 0x41b   : > { %v1607_v4 = vpop.eup %1606  ;;  %v1204_v56 = vadd.f32 %v2265_v13, %v1184_v51  ;;  %1624 = vrsqrt.f32 %v1139_v54  ;;  %v1142_v44 = vadd.f32 1e-05, %v1126_v57  ;;  %v1125_v8 = vmul.f32 0.0625, %v1107_v27 }
 0x41c   : > { %1626 = vpow2.f32 %v1426_v29  ;;  %v1203_v14 = vadd.f32 %v2265_v13, %v1183_v19  ;;  %v1186_v36 = vmul.f32 %v2260_v43, %v1166_v42  ;;  %v1165_v2 = vmul.f32 %v1607_v4, %v2200_v28 }
 0x41d   : > { %v1609_v52 = vpop.eup %1608  ;;  %v1429_v9 = vmul.f32 -1.442695, %v1204_v56  ;;  %1628 = vrsqrt.f32 %v1142_v44  ;;  %v1141_v5 = vadd.f32 1e-05, %v1125_v8 }
 0x41e   : > { %v1428_v25 = vmul.f32 -1.442695, %v1203_v14  ;;  %v1206_v32 = vadd.f32 %v2265_v13, %v1186_v36  ;;  %v1185_v46 = vmul.f32 %v2260_v43, %v1165_v2  ;;  %v1168_v48 = vmul.f32 %v1609_v52, %v2206_v40 }
 0x41f   : > { %v1611_v26 = vpop.eup %1610  ;;  %1630 = vpow2.f32 %v1429_v9 }
 0x420   : > { %1632 = vpow2.f32 %v1428_v25  ;;  %v1431_v18 = vmul.f32 -1.442695, %v1206_v32  ;;  %v1205_v58 = vadd.f32 %v2265_v13, %v1185_v46  ;;  %v1188_v20 = vmul.f32 %v2260_v43, %v1168_v48 }
 0x421   : > { %v1167_v28 = vmul.f32 %v1611_v26, %v2212_v12  ;;  %1634 = vrsqrt.f32 %v1141_v5 }
 0x422   : > { %v1613_v23 = vpop.eup %1612  ;;  %1636 = vpow2.f32 %v1431_v18  ;;  %v1430_v15 = vmul.f32 -1.442695, %v1205_v58  ;;  %v1208_v33 = vadd.f32 %v2265_v13, %v1188_v20 }
 0x423   : > { %v1615_v6 = vpop.eup %1614  ;;  %v1187_v21 = vmul.f32 %v2260_v43, %v1167_v28  ;;  %v1170_v40 = vmul.f32 %v1613_v23, %v2218_v63 }
 0x424   : > { %v1617_v53 = vpop.eup %1616  ;;  %v1264_v59 = vadd.f32 1.0, %v1615_v6  ;;  %1638 = vpow2.f32 %v1430_v15  ;;  %v1433_v0 = vmul.f32 -1.442695, %v1208_v33 }
 0x425   : > { %v1619_v22 = vpop.eup %1618  ;;  %v1207_v30 = vadd.f32 %v2265_v13, %v1187_v21  ;;  %v1190_v12 = vmul.f32 %v2260_v43, %v1170_v40  ;;  %v1169_v10 = vmul.f32 %v1617_v53, %v2224_v61 }
 0x426   : > { %v1621_v31 = vpop.eup %1620  ;;  %1640 = vrcp.f32 %v1264_v59  ;;  %v1263_v7 = vadd.f32 1.0, %v1619_v22 }
 0x427   : > { %v1623_v1 = vpop.eup %1622  ;;  %1642 = vpow2.f32 %v1433_v0  ;;  %v1432_v60 = vmul.f32 -1.442695, %v1207_v30  ;;  %v1210_v37 = vadd.f32 %v2265_v13, %v1190_v12  ;;  %v1189_v63 = vmul.f32 %v2260_v43, %v1169_v10 }
 0x428   : > { %v1625_v34 = vpop.eup %1624  ;;  %1644 = vrcp.f32 %v1263_v7  ;;  %v1266_v47 = vadd.f32 1.0, %v1623_v1  ;;  %v1172_v35 = vmul.f32 %v1621_v31, %v2230_v11 }
 0x429   : > { %v1627_v62 = vpop.eup %1626  ;;  %1646 = vpow2.f32 %v1432_v60  ;;  %v1435_v38 = vmul.f32 -1.442695, %v1210_v37  ;;  %v1209_v61 = vadd.f32 %v2265_v13, %v1189_v63  ;;  %v1171_v3 = vmul.f32 %v1625_v34, %v2236_v16 }
 0x42a   : > { %v1629_v49 = vpop.eup %1628  ;;  %1648 = vrcp.f32 %v1266_v47  ;;  %v1265_v41 = vadd.f32 1.0, %v1627_v62  ;;  %v1192_v39 = vmul.f32 %v2260_v43, %v1172_v35 }
 0x42b   : > { %1650 = vpow2.f32 %v1435_v38  ;;  %v1434_v45 = vmul.f32 -1.442695, %v1209_v61  ;;  %v1191_v50 = vmul.f32 %v2260_v43, %v1171_v3  ;;  %v1174_v24 = vmul.f32 %v1629_v49, %v2242_v17 }
 0x42c   : > { %v1631_v51 = vpop.eup %1630  ;;  %1652 = vrcp.f32 %v1265_v41  ;;  %v1212_v11 = vadd.f32 %v2265_v13, %v1192_v39 }
 0x42d   : > { %v1633_v54 = vpop.eup %1632  ;;  %v1268_v57 = vadd.f32 1.0, %v1631_v51  ;;  %1654 = vpow2.f32 %v1434_v45  ;;  %v1211_v16 = vadd.f32 %v2265_v13, %v1191_v50  ;;  %v1194_v27 = vmul.f32 %v2260_v43, %v1174_v24 }
 0x42e   : > { %v1635_v29 = vpop.eup %1634  ;;  %v1267_v19 = vadd.f32 1.0, %v1633_v54  ;;  %v1437_v42 = vmul.f32 -1.442695, %v1212_v11 }
 0x42f   : > { %v1637_v4 = vpop.eup %1636  ;;  %1656 = vrcp.f32 %v1268_v57  ;;  %v1436_v56 = vmul.f32 -1.442695, %v1211_v16  ;;  %v1214_v17 = vadd.f32 %v2265_v13, %v1194_v27  ;;  %v1173_v44 = vmul.f32 %v1635_v29, %v2248_v55 }
 0x430   : > { %1658 = vrcp.f32 %v1267_v19  ;;  %v1270_v8 = vadd.f32 1.0, %v1637_v4 }
 0x431   : > { %v1639_v14 = vpop.eup %1638  ;;  %1660 = vpow2.f32 %v1437_v42  ;;  %v1439_v36 = vmul.f32 -1.442695, %v1214_v17  ;;  %v1193_v2 = vmul.f32 %v2260_v43, %v1173_v44 }
 0x432   : > { %1662 = vrcp.f32 %v1270_v8  ;;  %v1269_v52 = vadd.f32 1.0, %v1639_v14 }
 0x433   : > { %v1641_v9 = vpop.eup %1640  ;;  %1664 = vpow2.f32 %v1436_v56  ;;  %v1213_v55 = vadd.f32 %v2265_v13, %v1193_v2 }
 0x434   : > { %v1643_v5 = vpop.eup %1642  ;;  %1312 = vst.msk [vmem:[%s2318_s28 + $0x8] sm:$0xff] %vm965_vm2, %v1641_v9  ;;  %1666 = vrcp.f32 %v1269_v52 }
 0x435   : > { %v1645_v25 = vpop.eup %1644  ;;  %v1272_v32 = vadd.f32 1.0, %v1643_v5  ;;  %1668 = vpow2.f32 %v1439_v36  ;;  %v1438_v46 = vmul.f32 -1.442695, %v1213_v55 }
 0x436   : > { %v1647_v48 = vpop.eup %1646  ;;  %1311 = vst.msk [vmem:[%s2318_s28] sm:$0xff] %vm965_vm2, %v1645_v25 }
 0x437   : > { %v1649_v43 = vpop.eup %1648  ;;  %1670 = vrcp.f32 %v1272_v32  ;;  %v1271_v26 = vadd.f32 1.0, %v1647_v48 }
 0x438   : > { %v1651_v18 = vpop.eup %1650  ;;  %1314 = vst.msk [vmem:[%s2318_s28 + $0x18] sm:$0xff] %vm965_vm2, %v1649_v43  ;;  %1672 = vpow2.f32 %v1438_v46 }
 0x439   : > { %v1653_v13 = vpop.eup %1652  ;;  %1674 = vrcp.f32 %v1271_v26  ;;  %v1274_v58 = vadd.f32 1.0, %v1651_v18 }
 0x43a   : > { %v1655_v20 = vpop.eup %1654  ;;  %1313 = vst.msk [vmem:[%s2318_s28 + $0x10] sm:$0xff] %vm965_vm2, %v1653_v13 }
 0x43b   : > { %1676 = vrcp.f32 %v1274_v58  ;;  %v1273_v28 = vadd.f32 1.0, %v1655_v20 }
 0x43c   : > { %v1657_v23 = vpop.eup %1656 }
 0x43d   : > { %v1659_v15 = vpop.eup %1658  ;;  %1316 = vst.msk [vmem:[%s2318_s28 + $0x28] sm:$0xff] %vm965_vm2, %v1657_v23  ;;  %1678 = vrcp.f32 %v1273_v28 }
 0x43e   : > { %v1661_v33 = vpop.eup %1660  ;;  %1315 = vst.msk [vmem:[%s2318_s28 + $0x20] sm:$0xff] %vm965_vm2, %v1659_v15 }
 0x43f   : > { %v1663_v6 = vpop.eup %1662  ;;  %v1276_v21 = vadd.f32 1.0, %v1661_v33 }
 0x440   : > { %v1665_v40 = vpop.eup %1664  ;;  %1318 = vst.msk [vmem:[%s2318_s28 + $0x38] sm:$0xff] %vm965_vm2, %v1663_v6 }
 0x441   : > { %v1667_v53 = vpop.eup %1666  ;;  %1680 = vrcp.f32 %v1276_v21  ;;  %v1275_v59 = vadd.f32 1.0, %v1665_v40 }
 0x442   : > { %v1669_v0 = vpop.eup %1668  ;;  %1317 = vst.msk [vmem:[%s2318_s28 + $0x30] sm:$0xff] %vm965_vm2, %v1667_v53 }
 0x443   : > { %1682 = vrcp.f32 %v1275_v59  ;;  %v1278_v22 = vadd.f32 1.0, %v1669_v0 }
 0x444   : > { %v1671_v30 = vpop.eup %1670 }
 0x445   : > { %v1673_v12 = vpop.eup %1672  ;;  %1320 = vst.msk [vmem:[%s2318_s28 + $0x48] sm:$0xff] %vm965_vm2, %v1671_v30  ;;  %1684 = vrcp.f32 %v1278_v22 }
 0x446   : > { %v1675_v10 = vpop.eup %1674  ;;  %v1277_v31 = vadd.f32 1.0, %v1673_v12 }
 0x447   : > { %1319 = vst.msk [vmem:[%s2318_s28 + $0x40] sm:$0xff] %vm965_vm2, %v1675_v10 }
 0x448   : > { %v1677_v7 = vpop.eup %1676  ;;  %1686 = vrcp.f32 %v1277_v31 }
 0x449   : > { %1322 = vst.msk [vmem:[%s2318_s28 + $0x58] sm:$0xff] %vm965_vm2, %v1677_v7 }
 0x44a   : > { %v1679_v1 = vpop.eup %1678 }
 0x44b   : > { %1321 = vst.msk [vmem:[%s2318_s28 + $0x50] sm:$0xff] %vm965_vm2, %v1679_v1 }
 0x44e   : > { %v1681_v60 = vpop.eup %1680 }
 0x44f   : > { %1324 = vst.msk [vmem:[%s2318_s28 + $0x68] sm:$0xff] %vm965_vm2, %v1681_v60 }
 0x450   : > { %v1683_v37 = vpop.eup %1682 }
 0x451   : > { %1323 = vst.msk [vmem:[%s2318_s28 + $0x60] sm:$0xff] %vm965_vm2, %v1683_v37 }
 0x452   : > { %v1685_v63 = vpop.eup %1684 }
 0x453   : > { %1326 = vst.msk [vmem:[%s2318_s28 + $0x78] sm:$0xff] %vm965_vm2, %v1685_v63 }
 0x455   : > { %v1687_v34 = vpop.eup %1686 }
 0x456   : > { %1325 = vst.msk [vmem:[%s2318_s28 + $0x70] sm:$0xff] %vm965_vm2, %v1687_v34 }
 0x457 PF: > { %s15_s18 = sadd.s32 1, %s1694_s18  }
 0x458   : > { %p12_p4 = scmp.ge.s32.totalorder %s15_s18, 4  }
 0x45a   :  { %14 = sbr.rel (!%p12_p4) target bundleno = 1 (0x1), region = 70 }

</bundles_post_ra>
